<compile_context>
chip_gen: v7x
topology: tpu7x:2x2x1
jax: 0.10.0
libtpu: 0.0.40
codegen_flags: <defaults>
</compile_context>

<pallas_src>
import functools
import math

import jax
import jax.numpy as jnp
import numpy as np
from jax.experimental import pallas as pl
from jax.experimental.pallas import tpu as pltpu

NEG_SLOPE = 0.2                  # GATv2Conv default negative_slope
BN_EPS = 1e-5                    # BatchNorm1d default eps
MASK_VALUE = -1e30               # additive mask for non-edges (f32)
VMEM_LIMIT = 32 * 1024 * 1024    # explicit scoped-VMEM limit (v5e/v6e/v7x safe)


# ----------------------------------------------------------------------------
# Kernels
# ----------------------------------------------------------------------------
def gatv2_proj_kernel(x_ref, wlt_ref, blt_ref, wr_ref, br_ref,
                      xr_ref, xlt_ref):
    """xr = x @ Wr + br (targets, [TI, H*C]); xl^T = Wl^T x^T + bl^T ([H*C, TI]).

    xl is produced directly in transposed layout via an NT matmul (contract
    last dims of both operands) -- no transpose op anywhere, lane-dense store.
    """
    xb = x_ref[...].astype(jnp.bfloat16)          # streamed operand -> bf16 MXU
    xr_ref[...] = (jnp.dot(xb, wr_ref[...], preferred_element_type=jnp.float32)
                   + br_ref[...])
    xlt_ref[...] = (jax.lax.dot_general(
        wlt_ref[...], xb, (((1,), (1,)), ((), ())),
        preferred_element_type=jnp.float32) + blt_ref[...])


def gatv2_attn_kernel(att_ref, adj_ref, xr_ref, xlt_ref, scale_ref, shift_ref,
                      out_ref, m_sc, l_sc, acc_sc, *, heads, ch, last_layer):
    """One (target-tile, source-tile) step of masked GATv2 attention.

    Flash-attention-style online softmax over the source grid axis; the output
    block is resident across that axis and only written at the last step.
    Scores use the LeakyReLU split (0.6 e + 0.4 |e|) and are accumulated
    channel-by-channel on a single [TI, TJ] tile (no [TI, C, TJ] intermediate).
    """
    j = pl.program_id(1)

    @pl.when(j == 0)
    def _init():
        m_sc[...] = jnp.full(m_sc.shape, -jnp.inf, jnp.float32)
        l_sc[...] = jnp.zeros(l_sc.shape, jnp.float32)
        acc_sc[...] = jnp.zeros(acc_sc.shape, jnp.float32)

    edge = adj_ref[...] > 0          # [TI, TJ] bool (int8 adjacency, no f32 cast)
    xr = xr_ref[...]                 # [TI, H*C] f32 target-side features
    xlt = xlt_ref[...]               # [H*C, TJ] f32 source-side features (transposed)

    for h in range(heads):
        c0 = h * ch
        # u_i = a_h . xr_i  ([TI,1]),  v_j = a_h . xl_j  ([1,TJ]); a_c are
        # scalar reads from SMEM -> scalar slot, no VMEM broadcast pressure.
        u = att_ref[c0] * xr[:, c0:c0 + 1]
        v = att_ref[c0] * xlt[c0:c0 + 1, :]
        for c in range(1, ch):
            a_c = att_ref[c0 + c]
            u = u + a_c * xr[:, c0 + c:c0 + c + 1]
            v = v + a_c * xlt[c0 + c:c0 + c + 1, :]

        # LeakyReLU(e) = 0.6 e + 0.4 |e| for negative_slope = 0.2, so
        #   s_ij = 0.6 (u_i + v_j) + 0.4 * sum_c a_c |xr_ic + xl_jc|
        # Masked entries are initialized to MASK_VALUE (self loops guarantee
        # at least one valid source per row).
        s = jnp.where(edge, 0.6 * (u + v), MASK_VALUE)       # [TI, TJ]
        for c in range(ch):
            idx = c0 + c
            t = xr[:, idx:idx + 1] + xlt[idx:idx + 1, :]      # [TI, TJ]
            s = s + (0.4 * att_ref[idx]) * jnp.abs(t)

        # Online softmax over source tiles (statistics kept in f32).
        m_prev = m_sc[h]                                              # [TI, 1]
        m_new = jnp.maximum(m_prev, jnp.max(s, axis=-1, keepdims=True))
        corr = jnp.exp(m_prev - m_new)
        p = jnp.exp(s - m_new)                                        # [TI, TJ]
        l_sc[h] = corr * l_sc[h] + jnp.sum(p, axis=-1, keepdims=True)
        # Aggregation p @ xl_h (contract source axis); bf16 MXU operands.
        agg = jax.lax.dot_general(
            p.astype(jnp.bfloat16), xlt[c0:c0 + ch, :].astype(jnp.bfloat16),
            (((1,), (1,)), ((), ())), preferred_element_type=jnp.float32)
        acc_sc[h] = corr * acc_sc[h] + agg                            # [TI, C]
        m_sc[h] = m_new

    @pl.when(j == pl.num_programs(1) - 1)
    def _finalize():
        parts = [acc_sc[h] * pl.reciprocal(l_sc[h], approx=True)
                 for h in range(heads)]
        if last_layer:
            # concat=False: mean over heads (scale = 1/H) + conv bias (shift),
            # then log_softmax over classes.
            y = parts[0]
            for h in range(1, heads):
                y = y + parts[h]
            y = y * scale_ref[...] + shift_ref[...]
            m = jnp.max(y, axis=-1, keepdims=True)
            z = y - m
            lse = jnp.log(jnp.sum(jnp.exp(z), axis=-1, keepdims=True))
            out_ref[...] = z - lse
        else:
            # concat=True: fused (conv bias + BatchNorm eval) scale/shift + ReLU.
            y = jnp.concatenate(parts, axis=-1)            # [TI, H*C]
            y = y * scale_ref[...] + shift_ref[...]
            out_ref[...] = jnp.maximum(y, 0.0)
            # TODO(synk): training-mode dropout omitted (eval forward); would
            # use pltpu.prng_seed / pltpu.prng_random_bits.


# ----------------------------------------------------------------------------
# Wrappers
# ----------------------------------------------------------------------------
def _proj_call(x, wlt_bf16, blt, wr_bf16, br, *, ti):
    n, fin = x.shape
    hc = wr_bf16.shape[1]
    return pl.pallas_call(
        gatv2_proj_kernel,
        out_shape=(jax.ShapeDtypeStruct((n, hc), jnp.float32),   # xr  [N, H*C]
                   jax.ShapeDtypeStruct((hc, n), jnp.float32)),  # xl^T [H*C, N]
        grid_spec=pltpu.PrefetchScalarGridSpec(
            num_scalar_prefetch=0,
            grid=(n // ti,),
            in_specs=[
                pl.BlockSpec((ti, fin), lambda i: (i, 0)),   # x row tile
                pl.BlockSpec((hc, fin), lambda i: (0, 0)),   # Wl^T (bf16)
                pl.BlockSpec((hc, 1), lambda i: (0, 0)),     # bl^T
                pl.BlockSpec((fin, hc), lambda i: (0, 0)),   # Wr (bf16)
                pl.BlockSpec((1, hc), lambda i: (0, 0)),     # br
            ],
            out_specs=[pl.BlockSpec((ti, hc), lambda i: (i, 0)),
                       pl.BlockSpec((hc, ti), lambda i: (0, i))],
        ),
        compiler_params=pltpu.CompilerParams(
            dimension_semantics=("parallel",),
            vmem_limit_bytes=VMEM_LIMIT),
    )(x, wlt_bf16, blt, wr_bf16, br)


def _attn_call(att_vec, adj_i8, xr, xlt, scale, shift, *, heads, ch, d_out,
               last_layer, ti, tj):
    n = xr.shape[0]
    hc = heads * ch
    kernel = functools.partial(gatv2_attn_kernel, heads=heads, ch=ch,
                               last_layer=last_layer)
    cost = pl.CostEstimate(
        flops=int(n * n * heads * (3 * ch + 6) + 2 * n * n * hc),
        transcendentals=int(n * n * heads),
        bytes_accessed=int(adj_i8.size + 4 * (xr.size + xlt.size + n * d_out)))
    return pl.pallas_call(
        kernel,
        out_shape=jax.ShapeDtypeStruct((n, d_out), jnp.float32),
        grid_spec=pltpu.PrefetchScalarGridSpec(
            num_scalar_prefetch=0,
            grid=(n // ti, n // tj),
            in_specs=[
                pl.BlockSpec(memory_space=pltpu.MemorySpace.SMEM),  # att (H*C,)
                pl.BlockSpec((ti, tj), lambda i, j: (i, j)),        # int8 adjacency
                pl.BlockSpec((ti, hc), lambda i, j: (i, 0)),        # xr (targets)
                pl.BlockSpec((hc, tj), lambda i, j: (0, j)),        # xl^T (sources)
                pl.BlockSpec((1, d_out), lambda i, j: (0, 0)),      # fused scale
                pl.BlockSpec((1, d_out), lambda i, j: (0, 0)),      # fused shift
            ],
            out_specs=pl.BlockSpec((ti, d_out), lambda i, j: (i, 0)),
            scratch_shapes=[
                pltpu.VMEM((heads, ti, 1), jnp.float32),    # running max
                pltpu.VMEM((heads, ti, 1), jnp.float32),    # running denom
                pltpu.VMEM((heads, ti, ch), jnp.float32),   # running accumulator
            ]),
        compiler_params=pltpu.CompilerParams(
            dimension_semantics=("parallel", "arbitrary"),
            vmem_limit_bytes=VMEM_LIMIT),
        cost_estimate=cost,
    )(att_vec, adj_i8, xr, xlt, scale, shift)


def gatv2_forward(x, adj_i8, layers, *, ti=128, tj=256):
    n = x.shape[0]
    assert n % ti == 0 and n % tj == 0, "N must be divisible by the tile sizes"
    nl = len(layers)
    for li, lp in enumerate(layers):
        heads, ch = lp["heads"], lp["out_ch"]
        last = (li == nl - 1)
        xr, xlt = _proj_call(x, lp["wlt_bf16"], lp["blt"], lp["wr_bf16"],
                             lp["br"], ti=ti)
        d_out = ch if last else heads * ch
        x = _attn_call(lp["att_vec"], adj_i8, xr, xlt, lp["scale"], lp["shift"],
                       heads=heads, ch=ch, d_out=d_out, last_layer=last,
                       ti=ti, tj=tj)
    return x


# ----------------------------------------------------------------------------
# Pure-JAX reference (dense masked softmax, same bf16 MXU precision choices)
# ----------------------------------------------------------------------------
def gatv2_reference(x, adj_i8, layers):
    nl = len(layers)
    for li, lp in enumerate(layers):
        heads, ch = lp["heads"], lp["out_ch"]
        xb = x.astype(jnp.bfloat16)
        xl = jnp.dot(xb, lp["wl"].astype(jnp.bfloat16),
                     preferred_element_type=jnp.float32) + lp["bl"]
        xr = jnp.dot(xb, lp["wr"].astype(jnp.bfloat16),
                     preferred_element_type=jnp.float32) + lp["br"]
        outs = []
        for h in range(heads):
            xl_h = xl[:, h * ch:(h + 1) * ch]
            xr_h = xr[:, h * ch:(h + 1) * ch]
            a_h = lp["att"][0, h * ch:(h + 1) * ch]
            e = xr_h[:, None, :] + xl_h[None, :, :]
            e = jnp.where(e >= 0.0, e, NEG_SLOPE * e)
            s = jnp.where(adj_i8 > 0, jnp.sum(e * a_h, axis=-1), MASK_VALUE)
            p = jax.nn.softmax(s, axis=-1)
            outs.append(jnp.dot(p.astype(jnp.bfloat16), xl_h.astype(jnp.bfloat16),
                                preferred_element_type=jnp.float32))
        if li < nl - 1:
            y = jnp.concatenate(outs, axis=-1) + lp["bias"]
            y = (y - lp["mean"]) * jax.lax.rsqrt(lp["var"] + BN_EPS)
            y = y * lp["gamma"] + lp["beta"]
            x = jnp.maximum(y, 0.0)
        else:
            y = sum(outs) / float(heads) + lp["bias"]
            x = jax.nn.log_softmax(y, axis=-1)
    return x


# ----------------------------------------------------------------------------
# Parameter construction
# ----------------------------------------------------------------------------
def make_layer(key, in_dim, out_ch, heads, concat):
    ks = jax.random.split(key, 8)

    def glorot(k, shape):
        limit = math.sqrt(6.0 / (shape[0] + shape[1]))
        return jax.random.uniform(k, shape, jnp.float32, -limit, limit)

    hc = heads * out_ch
    return dict(
        heads=heads, out_ch=out_ch,
        wl=glorot(ks[0], (in_dim, hc)),
        bl=0.1 * jax.random.normal(ks[3], (1, hc), jnp.float32),
        wr=glorot(ks[1], (in_dim, hc)),
        br=0.1 * jax.random.normal(ks[4], (1, hc), jnp.float32),
        att=glorot(ks[2], (1, hc)),
        bias=0.1 * jax.random.normal(ks[5], (1, hc if concat else out_ch),
                                     jnp.float32),
        gamma=jax.random.uniform(ks[6], (1, hc), jnp.float32, 0.5, 1.5),
        beta=0.1 * jax.random.normal(ks[7], (1, hc), jnp.float32),
        mean=0.1 * jax.random.normal(ks[6], (1, hc), jnp.float32),
        var=jax.random.uniform(ks[7], (1, hc), jnp.float32, 0.5, 1.5),
    )


def prepare_layer(lp, last):
    """Precompute kernel-side derived params (bf16 weights, fused BN, layouts)."""
    out = dict(lp)
    out["wlt_bf16"] = lp["wl"].T.astype(jnp.bfloat16)    # [H*C, Fin]
    out["blt"] = lp["bl"].T                              # [H*C, 1]
    out["wr_bf16"] = lp["wr"].astype(jnp.bfloat16)       # [Fin, H*C]
    out["att_vec"] = lp["att"][0]                        # [H*C]  (SMEM scalars)
    if last:
        out["scale"] = jnp.full((1, lp["out_ch"]), 1.0 / lp["heads"], jnp.float32)
        out["shift"] = lp["bias"]
    else:
        bn_scale = lp["gamma"] * jax.lax.rsqrt(lp["var"] + BN_EPS)
        out["scale"] = bn_scale
        out["shift"] = lp["beta"] + (lp["bias"] - lp["mean"]) * bn_scale
    return out


if __name__ == "__main__":
    key = jax.random.PRNGKey(0)
    N, E = 256, 2048
    in_channels, hidden_channels, out_channels = 16, 8, 8
    num_layers = 3
    layer_heads = [2, 2, 1]
    TI, TJ = 128, 256

    kx, ke1, ke2, kp = jax.random.split(key, 4)
    x = jax.random.normal(kx, (N, in_channels), jnp.float32)
    src = jax.random.randint(ke1, (E,), 0, N)
    dst = jax.random.randint(ke2, (E,), 0, N)

    # Dense int8 adjacency mask with self loops: adj[i, j] = 1 iff message j->i
    # (matches GATv2Conv(add_self_loops=True); duplicate edges collapse).
    adj = jnp.zeros((N, N), jnp.int8)
    adj = adj.at[dst, src].set(1)
    adj = adj.at[jnp.arange(N), jnp.arange(N)].set(1)

    keys = jax.random.split(kp, num_layers)
    layers = [make_layer(keys[0], in_channels, hidden_channels, layer_heads[0],
                         True)]
    for i in range(1, num_layers - 1):
        layers.append(make_layer(keys[i], hidden_channels * layer_heads[i - 1],
                                 hidden_channels, layer_heads[i], True))
    layers.append(make_layer(keys[-1], hidden_channels * layer_heads[num_layers - 2],
                             out_channels, layer_heads[num_layers - 1], False))

    prepped = [prepare_layer(lp, li == num_layers - 1)
               for li, lp in enumerate(layers)]

    out = jax.block_until_ready(gatv2_forward(x, adj, prepped, ti=TI, tj=TJ))
    ref = jax.block_until_ready(gatv2_reference(x, adj, layers))

    assert out.shape == (N, out_channels)
    assert bool(jnp.all(jnp.isfinite(out)))
    np.testing.assert_allclose(np.asarray(out), np.asarray(ref),
                               atol=5e-2, rtol=5e-2)
    print("KERNEL_OK")
</pallas_src>

<mosaic_0001>
module attributes {stable_mosaic.version = 11 : i64} {
  func.func @gatv2_proj_kernel(%arg0: i32, %arg1: memref<128x16xf32, #tpu.memory_space<vmem>>, %arg2: memref<16x16xbf16, #tpu.memory_space<vmem>>, %arg3: memref<16x1xf32, #tpu.memory_space<vmem>>, %arg4: memref<16x16xbf16, #tpu.memory_space<vmem>>, %arg5: memref<1x16xf32, #tpu.memory_space<vmem>>, %arg6: memref<128x16xf32, #tpu.memory_space<vmem>>, %arg7: memref<16x128xf32, #tpu.memory_space<vmem>>) attributes {dimension_semantics = [#tpu.dimension_semantics<parallel>], iteration_bounds = array<i64: 2>, scalar_prefetch = 0 : i64, scratch_operands = 0 : i64, tpu.core_type = #tpu.core_type<tc>, window_params = [{transform_indices = @transform_0, window_bounds = array<i64: 128, 16>}, {pipeline_mode = #tpu.pipeline_mode<synchronous>, transform_indices = @transform_1, window_bounds = array<i64: 16, 16>}, {pipeline_mode = #tpu.pipeline_mode<synchronous>, transform_indices = @transform_2, window_bounds = array<i64: 16, 1>}, {pipeline_mode = #tpu.pipeline_mode<synchronous>, transform_indices = @transform_3, window_bounds = array<i64: 16, 16>}, {pipeline_mode = #tpu.pipeline_mode<synchronous>, transform_indices = @transform_4, window_bounds = array<i64: 1, 16>}, {transform_indices = @transform_5, window_bounds = array<i64: 128, 16>}, {transform_indices = @transform_6, window_bounds = array<i64: 16, 128>}]} {
    %c0 = arith.constant 0 : index
    %c0_0 = arith.constant 0 : index
    %0 = vector.load %arg1[%c0, %c0_0] : memref<128x16xf32, #tpu.memory_space<vmem>>, vector<128x16xf32>
    %1 = arith.truncf %0 : vector<128x16xf32> to vector<128x16xbf16>
    %c0_1 = arith.constant 0 : index
    %c0_2 = arith.constant 0 : index
    %2 = vector.load %arg4[%c0_1, %c0_2] : memref<16x16xbf16, #tpu.memory_space<vmem>>, vector<16x16xbf16>
    %cst = arith.constant dense<0.000000e+00> : vector<128x16xf32>
    %3 = tpu.matmul %1, %2, %cst {dimension_numbers = #tpu.dot_dimension_numbers<[1], [0], [0], [1], [0, 0, 1, 1], [], []>} : vector<128x16xbf16>, vector<16x16xbf16>, vector<128x16xf32> -> vector<128x16xf32>
    %c0_3 = arith.constant 0 : index
    %c0_4 = arith.constant 0 : index
    %4 = vector.load %arg5[%c0_3, %c0_4] : memref<1x16xf32, #tpu.memory_space<vmem>>, vector<1x16xf32>
    %5 = vector.broadcast %4 : vector<1x16xf32> to vector<128x16xf32>
    %6 = arith.addf %3, %5 : vector<128x16xf32>
    %c0_5 = arith.constant 0 : index
    %c0_6 = arith.constant 0 : index
    %7 = vector.load %arg6[%c0_5, %c0_6] : memref<128x16xf32, #tpu.memory_space<vmem>>, vector<128x16xf32>
    tpu.vector_store %arg6[%c0_5, %c0_6], %6 {strides = array<i32>} : memref<128x16xf32, #tpu.memory_space<vmem>>, vector<128x16xf32>,
    %c0_7 = arith.constant 0 : index
    %c0_8 = arith.constant 0 : index
    %8 = vector.load %arg2[%c0_7, %c0_8] : memref<16x16xbf16, #tpu.memory_space<vmem>>, vector<16x16xbf16>
    %cst_9 = arith.constant dense<0.000000e+00> : vector<16x128xf32>
    %9 = tpu.matmul %8, %1, %cst_9 {dimension_numbers = #tpu.dot_dimension_numbers<[1], [1], [0], [0], [0, 0, 1, 0], [], []>} : vector<16x16xbf16>, vector<128x16xbf16>, vector<16x128xf32> -> vector<16x128xf32>
    %c0_10 = arith.constant 0 : index
    %c0_11 = arith.constant 0 : index
    %10 = vector.load %arg3[%c0_10, %c0_11] : memref<16x1xf32, #tpu.memory_space<vmem>>, vector<16x1xf32>
    %11 = vector.broadcast %10 : vector<16x1xf32> to vector<16x128xf32>
    %12 = arith.addf %9, %11 : vector<16x128xf32>
    %c0_12 = arith.constant 0 : index
    %c0_13 = arith.constant 0 : index
    %13 = vector.load %arg7[%c0_12, %c0_13] : memref<16x128xf32, #tpu.memory_space<vmem>>, vector<16x128xf32>
    tpu.vector_store %arg7[%c0_12, %c0_13], %12 {strides = array<i32>} : memref<16x128xf32, #tpu.memory_space<vmem>>, vector<16x128xf32>,
    return
  }
  func.func @transform_0(%arg0: i32) -> (i32, i32) {
    %c0_i32 = arith.constant 0 : i32
    %c0_i32_0 = arith.constant 0 : i32
    return %arg0, %c0_i32 : i32, i32
  }
  func.func @transform_1(%arg0: i32) -> (i32, i32) {
    %c0_i32 = arith.constant 0 : i32
    %c0_i32_0 = arith.constant 0 : i32
    %c0_i32_1 = arith.constant 0 : i32
    return %c0_i32, %c0_i32_0 : i32, i32
  }
  func.func @transform_2(%arg0: i32) -> (i32, i32) {
    %c0_i32 = arith.constant 0 : i32
    %c0_i32_0 = arith.constant 0 : i32
    %c0_i32_1 = arith.constant 0 : i32
    return %c0_i32, %c0_i32_0 : i32, i32
  }
  func.func @transform_3(%arg0: i32) -> (i32, i32) {
    %c0_i32 = arith.constant 0 : i32
    %c0_i32_0 = arith.constant 0 : i32
    %c0_i32_1 = arith.constant 0 : i32
    return %c0_i32, %c0_i32_0 : i32, i32
  }
  func.func @transform_4(%arg0: i32) -> (i32, i32) {
    %c0_i32 = arith.constant 0 : i32
    %c0_i32_0 = arith.constant 0 : i32
    %c0_i32_1 = arith.constant 0 : i32
    return %c0_i32, %c0_i32_0 : i32, i32
  }
  func.func @transform_5(%arg0: i32) -> (i32, i32) {
    %c0_i32 = arith.constant 0 : i32
    %c0_i32_0 = arith.constant 0 : i32
    return %arg0, %c0_i32 : i32, i32
  }
  func.func @transform_6(%arg0: i32) -> (i32, i32) {
    %c0_i32 = arith.constant 0 : i32
    %c0_i32_0 = arith.constant 0 : i32
    return %c0_i32, %arg0 : i32, i32
  }
}

</mosaic_0001>

<bundles_post_ra>
// kernel: tpu_custom_call.1
= control target key start
LH: loop header
LB: loop body
LE: loop exit
PB: predicated region body
PF: predicated region fallthrough
CT: control target
= control target key end

     0   :  { %12 = vsyncpa [#allocation3], 0  ;;  %s1058_s0 = inlined_call_operand.vmem [shape: f32[256,16], index: 0, kind: input, shape index: {}]   ;;  %s1059_s1 = inlined_call_operand.vmem [shape: bf16[16,16], index: 1, kind: input, shape index: {}]   ;;  %s1060_s2 = inlined_call_operand.vmem [shape: f32[16,1], index: 2, kind: input, shape index: {}]   ;;  %s1061_s3 = inlined_call_operand.vmem [shape: bf16[16,16], index: 3, kind: input, shape index: {}]   ;;  %s1062_s4 = inlined_call_operand.vmem [shape: f32[1,16], index: 4, kind: input, shape index: {}]   ;;  %s1063_s5 = inlined_call_operand.vmem [shape: f32[256,16], index: 5, kind: output, shape index: {0}]   ;;  %s1064_s6 = inlined_call_operand.hbm [shape: f32[16,256], index: 6, kind: output, shape index: {1}]  }
   0x1   :  { %14 = vsyncpa [#allocation3 + $0x1], 0  ;;  %s853_s21 = smov 0   ;;  %s855_s22 = smov 0  }
   0x2   :  { %s857_s23 = smov 0   ;;  %s859_s24 = smov 0  }
   0x3 LB: > { %s874_s25 = sadd.s32 4294967295, %s809_s24   ;;  %s618_s26 = sadd.s32 4294967294, %s809_s24   ;;  %s809_s24 = sphi %s859_s24, %s1070_s24   ;;  %s805_s23 = sphi %s857_s23, %s1069_s23   ;;  %s801_s22 = sphi %s855_s22, %s1068_s22   ;;  %s797_s21 = sphi %s853_s21, %s1067_s21  }
   0x4   : > { %s878_s27 = sadd.s32 1, %s809_s24   ;;  %s163_s28 = sadd.s32 1, %s805_s23 }
   0x5   : > { %s160_s29 = ssub.s32 %s809_s24, %s878_s27  ;;  %p173_p0 = scmp.ne.s32.totalorder %s805_s23, %s801_s22 }
   0x6   : > { %p161_p1 = scmp.eq.s32.totalorder %s160_s29, 0  ;;  %p174_p2 = scmp.eq.s32.totalorder %s874_s25, 1 }
   0x7   : > { %p179_p3 = scmp.ne.s32.totalorder %s801_s22, %s797_s21  ;;  %p180_p4 = scmp.eq.s32.totalorder %s618_s26, 1 }
   0x8   : > { %s889_s30 = scalar_select %p161_p1, %s805_s23, %s163_s28  }
   0x9   : > { %p891_p5 = por %p174_p2, %p173_p0  ;;  %p895_p6 = por %p180_p4, %p179_p3 }
   0xa   : > { %p621_p7 = scmp.ge.s32.totalorder %s809_s24, 1  ;;  %p219_p8 = scmp.lt.s32.totalorder %s809_s24, 3 }
   0xc   : > { %p220_p9 = pnand %p621_p7, %p219_p8 }
   0xd   : > { %s623_s9 = sshll.u32 (!%p220_p9), %s874_s25, 4  ;;  %v745_v0 = vld [vmem:[%s1061_s3] sm:$0xff] (!%p220_p9)   ;;  %v811_v1 = vmov (!%p220_p9), 0.0   ;;  %vm812_vm0 = vmmov (!%p220_p9), 0   ;;  %v813_v3 = vmov (!%p220_p9), 0   ;;  %v447_v4 = vld [vmem:[%s1060_s2 + $0x8] sm:$0xff] (!%p220_p9) }
   0xe   : > { %223 = sbr.rel (%p220_p9) target bundleno = 323 (0x143), region = 40  ;;  %679 = vmatprep.subr.bf16.mxu1 (!%p220_p9), %v811_v1  ;;  %p255_p10 = scmp.lt.s32.totalorder (!%p220_p9), %s623_s9, 31  ;;  %661 = vmatprep.subr.bf16.mxu0 (!%p220_p9), %v745_v0  ;;  %v446_v2 = vld [vmem:[%s1060_s2] sm:$0xff] (!%p220_p9)  ;;  %vm306_vm1 = vcmask (!%p220_p9), 130048  }
   0xf   : > { %695 = vmatprep.mubr.msk.bf16.mxu1 (!%p220_p9), %vm812_vm0, %v811_v1  ;;  %662 = vmatpush3.bf16.msra.mxu0 (!%p220_p9), %v745_v0  ;;  %v746_v37 = vld [vmem:[%s1059_s1] sm:$0xff] (!%p220_p9)   ;;  %s640_s16 = sshll.u32 (!%p220_p9), %s874_s25, 7  ;;  %s814_s26 = smov (!%p220_p9), [#allocation2]  }
  0x10   : > { %744 = vset.pattern.permute.xlu0 (!%p220_p9), %v813_v3  ;;  %v627_v38 = vld [vmem:[%s1062_s4] ss:$0 sm:$0xff] (!%p220_p9)  ;;  %s751_s28 = sshll.u32 (!%p220_p9), %s814_s26, 4  ;;  %s752_s28 = int_to_ptr.vmem [resolvable:$false] %s751_s28 }
  0x11   : > { %450 = vperm.xlu0 (!%p220_p9), %744, %v446_v2   ;;  %s753_s29 = scalar_lea.vmem (!%p220_p9), %s752_s28, 512 }
  0x15   : > { %s1072_s9 = smov (!%p255_p10, %s623_s9), 31  ;;  %455 = vperm.xlu0 %744, %v447_v4  }
  0x16   : > { %s624_s14 = sshll.u32 %s1072_s9, 3  ;;  %s251_s9 = sand.u32 1, %s801_s22  }
  0x17   : > { %s921_s19 = scalar_lea.vmem %s1058_s0, %s624_s14  ;;  %s974_s12 = scalar_lea.vmem %s1063_s5, %s624_s14 }
  0x18   : > { %v267_v5 = vld [vmem:[%s921_s19] sm:$0xff]  ;;  %v268_v6 = vld [vmem:[%s921_s19 + $0x8] sm:$0xff]  ;;  %v269_v7 = vld [vmem:[%s921_s19 + $0x10] sm:$0xff]  ;;  %s622_s13 = sshll.u32 %s251_s9, 4  ;;  %s1017_s25 = scalar_lea.sflag [#allocation3], %s251_s9 }
  0x19   : > { %v283_v8 = vpack.c.bf16 %v268_v6, %v267_v5  ;;  %v270_v9 = vld [vmem:[%s921_s19 + $0x18] sm:$0xff]  ;;  %v271_v10 = vld [vmem:[%s921_s19 + $0x20] sm:$0xff]  ;;  %v272_v11 = vld [vmem:[%s921_s19 + $0x28] sm:$0xff]  ;;  %s253_s14 = scalar_lea.vmem [#allocation2], %s622_s13 }
  0x1a   : > { %v284_v12 = vpack.c.bf16 %v270_v9, %v269_v7  ;;  %v285_v14 = vpack.c.bf16 %v272_v11, %v271_v10  ;;  %v273_v15 = vld [vmem:[%s921_s19 + $0x30] sm:$0xff]  ;;  %v274_v16 = vld [vmem:[%s921_s19 + $0x38] sm:$0xff]  ;;  %v275_v17 = vld [vmem:[%s921_s19 + $0x40] sm:$0xff]  ;;  %s531_s15 = sshll.u32 %s253_s14, 4  ;;  %s1010_s15 = int_to_ptr.vmem [resolvable:$true] %s531_s15 }
  0x1b   : > { %v308_v13 = vsel %vm306_vm1, %v283_v8, 0  ;;  %663 = vmatprep.mubr.msk.bf16.mxu0 %vm306_vm1, %v283_v8  ;;  %v276_v18 = vld [vmem:[%s921_s19 + $0x48] sm:$0xff]  ;;  %v286_v20 = vpack.c.bf16 %v274_v16, %v273_v15  ;;  %v277_v22 = vld [vmem:[%s921_s19 + $0x50] sm:$0xff]  ;;  %v278_v23 = vld [vmem:[%s921_s19 + $0x58] sm:$0xff]  ;;  %s747_s20 = scalar_lea.vmem %s1010_s15, 256  ;;  %p754_p0 = scmp.lt.s32.totalorder %s1010_s15, %s752_s28 }
  0x1c   : > { %680 = vmatpush3.bf16.xpose.msra.mxu1 %v308_v13  ;;  %664 = vmatmul.mubr.msk.bf16.vlgmr.msra.gmra.mrb[0].mxu0 %vm306_vm1, %v284_v12  ;;  %v311_v19 = vsel %vm306_vm1, %v284_v12, 0  ;;  %v287_v21 = vpack.c.bf16 %v276_v18, %v275_v17  ;;  %v279_v24 = vld [vmem:[%s921_s19 + $0x60] sm:$0xff]  ;;  %v280_v25 = vld [vmem:[%s921_s19 + $0x68] sm:$0xff]  ;;  %v314_v26 = vsel %vm306_vm1, %v285_v14, 0  ;;  %v288_v27 = vpack.c.bf16 %v278_v23, %v277_v22  ;;  %v281_v29 = vld [vmem:[%s921_s19 + $0x70] sm:$0xff]  ;;  %p748_p11 = scmp.ne.s32.totalorder %s1010_s15, %s747_s20  ;;  %p755_p1 = scmp.lt.s32.totalorder %s753_s29, %s747_s20 }
  0x1d   : > { %681 = vmatprep.subr.bf16.mxu1 %v811_v1  ;;  %667 = vmatprep.mubr.msk.bf16.mxu0 %vm306_vm1, %v285_v14  ;;  %v289_v28 = vpack.c.bf16 %v280_v25, %v279_v24  ;;  %v282_v30 = vld [vmem:[%s921_s19 + $0x78] sm:$0xff]  ;;  %v317_v31 = vsel %vm306_vm1, %v286_v20, 0  ;;  %s1015_s19 = scalar_lea.hbm %s1064_s6, %s640_s16 }
  0x1e   : > { %v290_v32 = vpack.c.bf16 %v282_v30, %v281_v29  ;;  %v320_v33 = vsel %vm306_vm1, %v287_v21, 0  ;;  %v323_v34 = vsel %vm306_vm1, %v288_v27, 0  ;;  %p749_p12 = pnand %p748_p11, %p891_p5  ;;  %p756_p2 = por %p755_p1, %p754_p0 }
  0x1f   : > { %v326_v35 = vsel %vm306_vm1, %v289_v28, 0 }
  0x20   : > { %v329_v36 = vsel %vm306_vm1, %v290_v32, 0  ;;  %p750_p13 = pneg %p749_p12 }
  0x22   : > { %p757_p3 = pnand %p756_p2, %p750_p13 }
  0x24   : > { %682 = vmatpush3.bf16.xpose.msra.mxu1 %v311_v19  ;;  %668 = vmatmul.mubr.msk.bf16.gmra.mrb[4].mxu0 %vm306_vm1, %v286_v20 }
  0x25   : > { %683 = vmatprep.subr.bf16.mxu1 %v811_v1  ;;  %671 = vmatprep.mubr.msk.bf16.mxu0 %vm306_vm1, %v287_v21 }
  0x2c   : > { %684 = vmatpush3.bf16.xpose.msra.mxu1 %v314_v26  ;;  %672 = vmatmul.mubr.msk.bf16.gmra.mrb[8].mxu0 %vm306_vm1, %v288_v27 }
  0x2d   : > { %685 = vmatprep.subr.bf16.mxu1 %v811_v1  ;;  %675 = vmatprep.mubr.msk.bf16.mxu0 %vm306_vm1, %v289_v28 }
  0x34   : > { %686 = vmatpush3.bf16.xpose.msra.mxu1 %v317_v31  ;;  %676 = vmatmul.mubr.msk.bf16.gmra.mrb[12].mxu0 %vm306_vm1, %v290_v32 }
  0x35   : > { %687 = vmatprep.subr.bf16.mxu1 %v811_v1 }
  0x3c   : > { %688 = vmatpush3.bf16.xpose.msra.mxu1 %v320_v33 }
  0x3d   : > { %689 = vmatprep.subr.bf16.mxu1 %v811_v1 }
  0x44   : > { %690 = vmatpush3.bf16.xpose.msra.mxu1 %v323_v34 }
  0x45   : > { %691 = vmatprep.subr.bf16.mxu1 %v811_v1 }
  0x4c   : > { %692 = vmatpush3.bf16.xpose.msra.mxu1 %v326_v35 }
  0x4d   : > { %693 = vmatprep.subr.bf16.mxu1 %v811_v1 }
  0x54   : > { %694 = vmatpush3.bf16.xpose.msra.mxu1 %v329_v36 }
  0x5b   : > { %696 = vmatmul.mubr.msk.bf16.vlgmr.msra.gmra.mrb[0].mxu1 %vm306_vm1, %v746_v37 }
  0x90   : > { %v451_v7 = vpop.permute.xlu0 %450 }
  0x94   : > { %v456_v11 = vpop.permute.xlu0 %455 }
  0xef   : > { %v665_v39 = vpop.f32.mrb[0].mxu0 }
  0xf0   : > { %v374_v40 = vadd.f32 %v665_v39, %v627_v38  ;;  %v365_v41 = vpop.f32.mrb[1].mxu0 }
  0xf1   : > { %v366_v42 = vadd.f32 %v627_v38, %v365_v41  ;;  %v666_v43 = vpop.f32.mrb[2].mxu0 }
  0xf2   : > { %430 = vst.msk [vmem:[%s974_s12 + $0x10] sm:$0xff] %vm306_vm1, %v374_v40  ;;  %v377_v44 = vadd.f32 %v666_v43, %v627_v38  ;;  %v368_v45 = vpop.f32.mrb[3].mxu0 }
  0xf3   : > { %428 = vst.msk [vmem:[%s974_s12] sm:$0xff] %vm306_vm1, %v366_v42  ;;  %v369_v46 = vadd.f32 %v627_v38, %v368_v45 }
  0xf4   : > { %431 = vst.msk [vmem:[%s974_s12 + $0x18] sm:$0xff] %vm306_vm1, %v377_v44 }
  0xf5   : > { %429 = vst.msk [vmem:[%s974_s12 + $0x8] sm:$0xff] %vm306_vm1, %v369_v46 }
  0xf7   : > { %v669_v47 = vpop.f32.mrb[4].mxu0 }
  0xf8   : > { %v390_v48 = vadd.f32 %v669_v47, %v627_v38  ;;  %v381_v49 = vpop.f32.mrb[5].mxu0 }
  0xf9   : > { %v382_v50 = vadd.f32 %v627_v38, %v381_v49  ;;  %v670_v51 = vpop.f32.mrb[6].mxu0 }
  0xfa   : > { %434 = vst.msk [vmem:[%s974_s12 + $0x30] sm:$0xff] %vm306_vm1, %v390_v48  ;;  %v393_v52 = vadd.f32 %v670_v51, %v627_v38  ;;  %v384_v53 = vpop.f32.mrb[7].mxu0 }
  0xfb   : > { %432 = vst.msk [vmem:[%s974_s12 + $0x20] sm:$0xff] %vm306_vm1, %v382_v50  ;;  %v385_v54 = vadd.f32 %v627_v38, %v384_v53 }
  0xfc   : > { %435 = vst.msk [vmem:[%s974_s12 + $0x38] sm:$0xff] %vm306_vm1, %v393_v52 }
  0xfd   : > { %433 = vst.msk [vmem:[%s974_s12 + $0x28] sm:$0xff] %vm306_vm1, %v385_v54 }
  0xff   : > { %v673_v55 = vpop.f32.mrb[8].mxu0 }
 0x100   : > { %v406_v56 = vadd.f32 %v673_v55, %v627_v38  ;;  %v397_v57 = vpop.f32.mrb[9].mxu0 }
 0x101   : > { %v398_v58 = vadd.f32 %v627_v38, %v397_v57  ;;  %v674_v59 = vpop.f32.mrb[10].mxu0 }
 0x102   : > { %438 = vst.msk [vmem:[%s974_s12 + $0x50] sm:$0xff] %vm306_vm1, %v406_v56  ;;  %v409_v60 = vadd.f32 %v674_v59, %v627_v38  ;;  %v400_v61 = vpop.f32.mrb[11].mxu0 }
 0x103   : > { %436 = vst.msk [vmem:[%s974_s12 + $0x40] sm:$0xff] %vm306_vm1, %v398_v58  ;;  %v401_v62 = vadd.f32 %v627_v38, %v400_v61 }
 0x104   : > { %439 = vst.msk [vmem:[%s974_s12 + $0x58] sm:$0xff] %vm306_vm1, %v409_v60 }
 0x105   : > { %437 = vst.msk [vmem:[%s974_s12 + $0x48] sm:$0xff] %vm306_vm1, %v401_v62 }
 0x107   : > { %v677_v63 = vpop.f32.mrb[12].mxu0 }
 0x108   : > { %v422_v0 = vadd.f32 %v677_v63, %v627_v38  ;;  %v413_v1 = vpop.f32.mrb[13].mxu0 }
 0x109   : > { %v414_v2 = vadd.f32 %v627_v38, %v413_v1  ;;  %v678_v3 = vpop.f32.mrb[14].mxu0 }
 0x10a   : > { %442 = vst.msk [vmem:[%s974_s12 + $0x70] sm:$0xff] %vm306_vm1, %v422_v0  ;;  %v425_v4 = vadd.f32 %v678_v3, %v627_v38  ;;  %v416_v5 = vpop.f32.mrb[15].mxu0 }
 0x10b   : > { %440 = vst.msk [vmem:[%s974_s12 + $0x60] sm:$0xff] %vm306_vm1, %v414_v2  ;;  %v417_v6 = vadd.f32 %v627_v38, %v416_v5 }
 0x10c   : > { %443 = vst.msk [vmem:[%s974_s12 + $0x78] sm:$0xff] %vm306_vm1, %v425_v4 }
 0x10d   : > { %441 = vst.msk [vmem:[%s974_s12 + $0x68] sm:$0xff] %vm306_vm1, %v417_v6 }
 0x12e   : > { %v500_v8 = vpop.f32.mrb[0].mxu1 }
 0x12f   : > { %v501_v9 = vadd.f32 %v500_v8, %v451_v7  ;;  %v697_v10 = vpop.f32.mrb[1].mxu1 }
 0x130   : > { %v503_v12 = vpop.f32.mrb[2].mxu1 }
 0x131   : > { %507 = vst [vmem:[%s253_s14] sm:$0xff] %v501_v9  ;;  %v504_v13 = vadd.f32 %v503_v12, %v456_v11  ;;  %v698_v14 = vpop.f32.mrb[3].mxu1 }
 0x133   : > { %508 = vst [vmem:[%s253_s14 + $0x8] sm:$0xff] %v504_v13 }
 0x134   : > { %760 = shalt.err (!%p757_p3)
}
 0x135   : > { %s761_s10 = scalar_lea.hbm %s1015_s19, 256  ;;  %s765_s9 = scalar_lea.hbm %s1064_s6, 512 }
 0x136   : > { %p762_p4 = scmp.ne.s32.totalorder %s1015_s19, %s761_s10  ;;  %p766_p9 = scmp.lt.u32.totalorder %s1015_s19, %s1064_s6 }
 0x137   : > { %p767_p10 = scmp.lt.u32.totalorder %s765_s9, %s761_s10  ;;  %p769_p12 = scmp.lt.u32.totalorder %s761_s10, %s1015_s19 }
 0x138   : > { %p763_p7 = pnand %p762_p4, %p891_p5 }
 0x139   : > { %p768_p11 = por %p767_p10, %p766_p9 }
 0x13a   : > { %p764_p8 = pneg %p763_p7 }
 0x13b   : > { %p770_p13 = por %p769_p12, %p768_p11 }
 0x13d   : > { %p771_p0 = pnand %p770_p13, %p764_p8 }
 0x13f   : > { %774 = shalt.err (!%p771_p0)
}
 0x140   : > { %s815_s16 = smov 128   ;;  %s816_s17 = smov 256  }
 0x141   : > { %s817_s18 = smov 8  }
 0x142   : > { %699 = dma.vmem_to_hbm [thread:$0]  (%p891_p5), %s1010_s15, 256, %s1015_s19, %s1017_s25, %s815_s16, %s816_s17, %s817_s18  }
 0x143 PF: > { %p705_p1 = scmp.ge.s32.totalorder %s809_s24, 2  ;;  %s554_s20 = sand.u32 1, %s797_s21  }
 0x144   : > { %s555_s26 = scalar_lea.sflag [#allocation3], %s554_s20 }
 0x145   : > { %p702_p2 = pnand %p705_p1, %p895_p6 }
 0x147   : > { %792 = dma.done.wait (!%p702_p2), %s555_s26, 256  }
 0x148   : > { %794 = vsyncadd (!%p702_p2), %s555_s26, 4294967040  ;;  %p17_p3 = scmp.ge.s32.totalorder %s878_s27, 4   ;;  %s1067_s21 = smov %s801_s22 }
 0x149   : > { %s1068_s22 = smov %s805_s23  ;;  %s1069_s23 = smov %s889_s30 }
 0x14a   : > { %s1070_s24 = smov %s878_s27  ;;  %19 = sbr.rel (!%p17_p3) target bundleno = 3 (0x3), region = 87 }
 0x151   :  { %560 = vsyncpa [#allocation3], 1 }
 0x152   :  { %562 = vsyncpa [#allocation3 + $0x1], 1 }

</bundles_post_ra>
